<compile_context>
chip_gen: v7x
topology: tpu7x:2x2x1
jax: 0.10.0
libtpu: 0.0.40
codegen_flags: <defaults>
</compile_context>

<pallas_src>
import functools

import jax
import jax.numpy as jnp
from jax.experimental import pallas as pl
from jax.experimental.pallas import tpu as pltpu


def _senet2d_kernel(x_ref, w_ref, o_ref, *, inv_hw, ch):
    # x_ref: (Bt, C, HWp)  batch chunk; channels in sublanes, spatial in lanes
    # w_ref: (C, 2*Ch)     [:, :Ch] = W1^T, [:, Ch:] = W2
    # o_ref: (Bt, C, HWp)

    # ---- squeeze: global average pool over the lane (spatial) axis --------
    # Accumulate in f32 regardless of input dtype; zero padding (if any)
    # contributes nothing and we divide by the true H*W.
    avg = jnp.sum(x_ref[...].astype(jnp.float32), axis=-1,
                  keepdims=True) * inv_hw                         # (Bt, C, 1)

    # ---- excitation MLP (tiny: C x Ch); VPU broadcasts + reductions -------
    w1t = w_ref[:, :ch].astype(jnp.float32)[None]                 # (1, C, Ch)
    w2 = w_ref[:, ch:].astype(jnp.float32)[None]                  # (1, C, Ch)
    # layer 1: h[b, j] = relu(sum_c W1[j, c] * avg[b, c])   (sublane reduce)
    h = jnp.maximum(jnp.sum(w1t * avg, axis=1, keepdims=True), 0.0)  # (Bt,1,Ch)
    # layer 2: g[b, c] = sum_j W2[c, j] * h[b, j]            (lane reduce)
    g = jnp.sum(w2 * h, axis=-1, keepdims=True)                   # (Bt, C, 1)
    # sigmoid gate (exp goes to the EUP slot)
    gate = 1.0 / (1.0 + jnp.exp(-g))                              # (Bt, C, 1)

    # ---- scale: re-read x from VMEM (don't keep the f32 tile live) --------
    # Gate is cast to the storage dtype so bf16 inputs stay bf16 on the VPU.
    o_ref[...] = x_ref[...] * gate.astype(o_ref.dtype)


def pack_weights(w1, w2):
    """Pack PyTorch-layout fc weights into one (C, 2*Ch) slab.

    w1: (C//ratio, C)  fc1 weight (nn.Linear, bias=False)
    w2: (C, C//ratio)  fc2 weight (nn.Linear, bias=False)
    """
    return jnp.concatenate([jnp.transpose(w1), w2], axis=1)       # (C, 2*Ch)


def senet2d(x_nchw, w1, w2, *, tile_budget_bytes=2 << 20):
    """SENet2D forward.  x_nchw: (B, C, H, W)."""
    B, C, H, W = x_nchw.shape
    Ch = w1.shape[0]
    HW = H * W
    # Pad the spatial axis up to a multiple of 128 -> lane-dense loads/stores.
    HWp = HW if HW % 128 == 0 else ((HW + 127) // 128) * 128
    itemsize = jnp.dtype(x_nchw.dtype).itemsize

    x2 = x_nchw.reshape(B, C, HW)          # free reshape for contiguous NCHW
    if HWp != HW:
        x2 = jnp.pad(x2, ((0, 0), (0, 0), (0, HWp - HW)))

    # ---- choose the per-step batch chunk Bt -------------------------------
    per_image_bytes = C * HWp * itemsize
    bt = int(max(1, min(B, tile_budget_bytes // max(per_image_bytes, 1))))
    if B >= 2:
        bt = min(bt, max(1, B // 2))       # keep grid >= 2 (both v7x TCs busy)
    while B % bt != 0:                     # avoid partial trailing blocks
        bt -= 1
    grid = (B // bt,)

    # TODO(synk): hoist pack_weights out of the per-call wrapper when the
    # weights are static across many calls.
    w_packed = pack_weights(w1, w2)        # (C, 2*Ch)

    # Double-buffered in + out tiles plus the (tiny) weight slab, with
    # headroom; clamp inside v7x's 64 MiB physical VMEM.
    tile_bytes = bt * per_image_bytes
    footprint = 4 * tile_bytes + 4 * w_packed.size * w_packed.dtype.itemsize
    vmem_limit = int(min(48 << 20, max(32 << 20, footprint + (4 << 20))))

    out = pl.pallas_call(
        functools.partial(_senet2d_kernel, inv_hw=1.0 / float(HW), ch=Ch),
        out_shape=jax.ShapeDtypeStruct((B, C, HWp), x_nchw.dtype),
        grid_spec=pltpu.PrefetchScalarGridSpec(
            num_scalar_prefetch=0,
            grid=grid,
            in_specs=[
                pl.BlockSpec((bt, C, HWp), lambda b: (b, 0, 0)),   # x chunk
                pl.BlockSpec((C, 2 * Ch), lambda b: (0, 0)),       # weights
            ],
            out_specs=pl.BlockSpec((bt, C, HWp), lambda b: (b, 0, 0)),
        ),
        compiler_params=pltpu.CompilerParams(
            dimension_semantics=("parallel",),
            vmem_limit_bytes=vmem_limit,
        ),
    )(x2, w_packed)

    if HWp != HW:
        out = out[..., :HW]
    return out.reshape(B, C, H, W)


def _reference(x, w1, w2):
    """Pure-JAX reference mirroring the PyTorch SENet2D.forward."""
    avg = jnp.mean(x, axis=(2, 3))                    # (B, C)
    h = jnp.maximum(avg @ w1.T, 0.0)                  # (B, Ch)
    g = h @ w2.T                                      # (B, C)
    gate = 1.0 / (1.0 + jnp.exp(-g))                  # sigmoid
    return x * gate[:, :, None, None]


if __name__ == "__main__":
    # ratio_rate defaults to 16, so use C=32 -> hidden = C // 16 = 2
    # (C=4 would make the hidden dim 0).
    ratio_rate = 16

    def run_case(B, C, H, W, seed):
        Ch = C // ratio_rate
        key = jax.random.PRNGKey(seed)
        kx, k1, k2 = jax.random.split(key, 3)
        x = jax.random.normal(kx, (B, C, H, W), jnp.float32)
        w1 = jax.random.normal(k1, (Ch, C), jnp.float32) * 0.2
        w2 = jax.random.normal(k2, (C, Ch), jnp.float32) * 0.2
        out = jax.block_until_ready(senet2d(x, w1, w2))
        ref = _reference(x, w1, w2)
        assert out.shape == (B, C, H, W)
        assert jnp.allclose(out, ref, rtol=1e-5, atol=1e-5), (
            float(jnp.max(jnp.abs(out - ref))))

    # Main demo shape (HW = 256, already lane-dense).
    run_case(2, 32, 16, 16, seed=0)
    # Exercise the HW-padding (7x7 -> 128 lanes) and Bt>1 batching paths.
    run_case(4, 32, 7, 7, seed=1)

    print("KERNEL_OK")
</pallas_src>

<mosaic_0001>
module attributes {stable_mosaic.version = 11 : i64} {
  func.func @_senet2d_kernel(%arg0: i32, %arg1: memref<1x32x256xf32, #tpu.memory_space<vmem>>, %arg2: memref<32x4xf32, #tpu.memory_space<vmem>>, %arg3: memref<1x32x256xf32, #tpu.memory_space<vmem>>) attributes {dimension_semantics = [#tpu.dimension_semantics<parallel>], iteration_bounds = array<i64: 2>, scalar_prefetch = 0 : i64, scratch_operands = 0 : i64, tpu.core_type = #tpu.core_type<tc>, window_params = [{transform_indices = @transform_0, window_bounds = array<i64: 1, 32, 256>}, {pipeline_mode = #tpu.pipeline_mode<synchronous>, transform_indices = @transform_1, window_bounds = array<i64: 32, 4>}, {transform_indices = @transform_2, window_bounds = array<i64: 1, 32, 256>}]} {
    %c0 = arith.constant 0 : index
    %c0_0 = arith.constant 0 : index
    %c0_1 = arith.constant 0 : index
    %0 = vector.load %arg1[%c0, %c0_0, %c0_1] : memref<1x32x256xf32, #tpu.memory_space<vmem>>, vector<1x32x256xf32>
    %cst = arith.constant dense<0.000000e+00> : vector<1x32xf32>
    %1 = vector.multi_reduction <add>, %0, %cst [2] : vector<1x32x256xf32> to vector<1x32xf32>
    %2 = vector.shape_cast %1 : vector<1x32xf32> to vector<1x32x1xf32>
    %cst_2 = arith.constant 3.906250e-03 : f32
    %3 = vector.broadcast %cst_2 : f32 to vector<1x32x1xf32>
    %4 = arith.mulf %2, %3 : vector<1x32x1xf32>
    %c0_3 = arith.constant 0 : index
    %c0_4 = arith.constant 0 : index
    %5 = vector.load %arg2[%c0_3, %c0_4] : memref<32x4xf32, #tpu.memory_space<vmem>>, vector<32x2xf32>
    %6 = vector.shape_cast %5 : vector<32x2xf32> to vector<1x32x2xf32>
    %c0_5 = arith.constant 0 : index
    %c2 = arith.constant 2 : index
    %7 = vector.load %arg2[%c0_5, %c2] : memref<32x4xf32, #tpu.memory_space<vmem>>, vector<32x2xf32>
    %8 = vector.shape_cast %7 : vector<32x2xf32> to vector<1x32x2xf32>
    %9 = vector.broadcast %4 : vector<1x32x1xf32> to vector<1x32x2xf32>
    %10 = arith.mulf %6, %9 : vector<1x32x2xf32>
    %cst_6 = arith.constant dense<0.000000e+00> : vector<1x2xf32>
    %11 = vector.multi_reduction <add>, %10, %cst_6 [1] : vector<1x32x2xf32> to vector<1x2xf32>
    %12 = vector.shape_cast %11 : vector<1x2xf32> to vector<1x1x2xf32>
    %cst_7 = arith.constant 0.000000e+00 : f32
    %13 = vector.broadcast %cst_7 : f32 to vector<1x1x2xf32>
    %14 = arith.maximumf %12, %13 : vector<1x1x2xf32>
    %15 = vector.broadcast %14 : vector<1x1x2xf32> to vector<1x32x2xf32>
    %16 = arith.mulf %8, %15 : vector<1x32x2xf32>
    %cst_8 = arith.constant dense<0.000000e+00> : vector<1x32xf32>
    %17 = vector.multi_reduction <add>, %16, %cst_8 [2] : vector<1x32x2xf32> to vector<1x32xf32>
    %18 = vector.shape_cast %17 : vector<1x32xf32> to vector<1x32x1xf32>
    %cst_9 = arith.constant 0.000000e+00 : f32
    %19 = vector.broadcast %cst_9 : f32 to vector<1x32x1xf32>
    %20 = arith.subf %19, %18 : vector<1x32x1xf32>
    %21 = math.exp %20 : vector<1x32x1xf32>
    %cst_10 = arith.constant 1.000000e+00 : f32
    %22 = vector.broadcast %cst_10 : f32 to vector<1x32x1xf32>
    %23 = arith.addf %22, %21 : vector<1x32x1xf32>
    %cst_11 = arith.constant 1.000000e+00 : f32
    %24 = vector.broadcast %cst_11 : f32 to vector<1x32x1xf32>
    %25 = arith.divf %24, %23 : vector<1x32x1xf32>
    %c0_12 = arith.constant 0 : index
    %c0_13 = arith.constant 0 : index
    %c0_14 = arith.constant 0 : index
    %26 = vector.load %arg1[%c0_12, %c0_13, %c0_14] : memref<1x32x256xf32, #tpu.memory_space<vmem>>, vector<1x32x256xf32>
    %27 = vector.broadcast %25 : vector<1x32x1xf32> to vector<1x32x256xf32>
    %28 = arith.mulf %26, %27 : vector<1x32x256xf32>
    %c0_15 = arith.constant 0 : index
    %c0_16 = arith.constant 0 : index
    %c0_17 = arith.constant 0 : index
    %29 = vector.load %arg3[%c0_15, %c0_16, %c0_17] : memref<1x32x256xf32, #tpu.memory_space<vmem>>, vector<1x32x256xf32>
    tpu.vector_store %arg3[%c0_15, %c0_16, %c0_17], %28 {strides = array<i32>} : memref<1x32x256xf32, #tpu.memory_space<vmem>>, vector<1x32x256xf32>,
    return
  }
  func.func @transform_0(%arg0: i32) -> (i32, i32, i32) {
    %c0_i32 = arith.constant 0 : i32
    %c0_i32_0 = arith.constant 0 : i32
    %c0_i32_1 = arith.constant 0 : i32
    return %arg0, %c0_i32, %c0_i32_0 : i32, i32, i32
  }
  func.func @transform_1(%arg0: i32) -> (i32, i32) {
    %c0_i32 = arith.constant 0 : i32
    %c0_i32_0 = arith.constant 0 : i32
    %c0_i32_1 = arith.constant 0 : i32
    return %c0_i32, %c0_i32_0 : i32, i32
  }
  func.func @transform_2(%arg0: i32) -> (i32, i32, i32) {
    %c0_i32 = arith.constant 0 : i32
    %c0_i32_0 = arith.constant 0 : i32
    %c0_i32_1 = arith.constant 0 : i32
    return %arg0, %c0_i32, %c0_i32_0 : i32, i32, i32
  }
}

</mosaic_0001>

<bundles_post_ra>
// kernel: tpu_custom_call.1
= control target key start
LH: loop header
LB: loop body
LE: loop exit
PB: predicated region body
PF: predicated region fallthrough
CT: control target
= control target key end

     0   :  { %7 = vsyncpa [#allocation3], 0  ;;  %s795_s0 = inlined_call_operand.hbm [shape: f32[2,32,256], index: 0, kind: input, shape index: {}]   ;;  %s796_s1 = inlined_call_operand.vmem [shape: f32[32,4], index: 1, kind: input, shape index: {}]   ;;  %s797_s2 = inlined_call_operand.hbm [shape: f32[2,32,256], index: 2, kind: output, shape index: {}]  }
   0x1   :  { %9 = vsyncpa [#allocation3 + $0x1], 0 }
   0x2   :  { %10 = vsyncpa [#allocation4], 0 }
   0x3   :  { %12 = vsyncpa [#allocation4 + $0x1], 0  ;;  %s577_s9 = smov 0   ;;  %s579_s10 = smov 0  }
   0x4   :  { %s581_s11 = smov 0   ;;  %s583_s12 = smov 0  }
   0x5 LB: > { %s598_s13 = sadd.s32 4294967295, %s552_s12   ;;  %s372_s14 = sadd.s32 4294967294, %s552_s12   ;;  %s552_s12 = sphi %s583_s12, %s810_s12   ;;  %s548_s11 = sphi %s581_s11, %s809_s11   ;;  %s544_s10 = sphi %s579_s10, %s808_s10   ;;  %s540_s9 = sphi %s577_s9, %s807_s9  }
   0x6   : > { %s602_s15 = sadd.s32 1, %s552_s12   ;;  %s25_s16 = sadd.s32 1, %s548_s11 }
   0x7   : > { %s22_s17 = ssub.s32 %s552_s12, %s602_s15  ;;  %p32_p0 = scmp.ne.s32.totalorder %s548_s11, %s544_s10 }
   0x8   : > { %p23_p1 = scmp.eq.s32.totalorder %s22_s17, 0  ;;  %p33_p2 = scmp.eq.s32.totalorder %s552_s12, 0 }
   0x9   : > { %p38_p3 = scmp.ne.s32.totalorder %s544_s10, %s540_s9  ;;  %p39_p4 = scmp.eq.s32.totalorder %s598_s13, 0 }
   0xa   : > { %s614_s18 = scalar_select %p23_p1, %s548_s11, %s25_s16  }
   0xb   : > { %p616_p5 = por %p33_p2, %p32_p0  ;;  %p620_p6 = por %p39_p4, %p38_p3 }
   0xc   : > { %p83_p7 = scmp.eq.s32.totalorder %s598_s13, 1  ;;  %p89_p8 = scmp.eq.s32.totalorder %s372_s14, 1 }
   0xd   : > { %p400_p10 = scmp.lt.s32.totalorder %s552_s12, 2  ;;  %s112_s23 = sand.u32 1, %s548_s11  }
   0xe   : > { %p627_p11 = por %p83_p7, %p32_p0  ;;  %p631_p12 = por %p89_p8, %p38_p3 }
   0xf   : > { %s386_s24 = sshll.u32 %s552_s12, 10  ;;  %s375_s25 = sshll.u32 %s112_s23, 6 }
  0x10   : > { %s801_s21 = scalar_select %p627_p11, 1, 0 }
  0x11   : > { %s802_s22 = scalar_select %p631_p12, 1, 0 }
  0x12   : > { %s640_s28 = scalar_lea.hbm %s795_s0, %s386_s24  ;;  %s116_s29 = scalar_lea.vmem [#allocation2], %s375_s25 }
  0x13   : > { %s123_s30 = sshll.u32 %s116_s29, 4  ;;  %p644_p13 = pnand %p400_p10, %p616_p5  ;;  %s648_s30 = int_to_ptr.vmem [resolvable:$true] %s123_s30 }
  0x14   : > { %s650_s4 = scalar_lea.sflag [#allocation3], %s112_s23  ;;  %s456_s5 = scalar_lea.hbm %s640_s28, 1024 }
  0x15   : > { %p457_p0 = scmp.ne.s32.totalorder %s640_s28, %s456_s5  ;;  %p458_p1 = pneg %p644_p13 }
  0x16   : > { %s461_s8 = scalar_lea.hbm %s795_s0, 2048  ;;  %p462_p4 = scmp.lt.u32.totalorder %s640_s28, %s795_s0 }
  0x17   : > { %p459_p2 = pnand %p458_p1, %p457_p0  ;;  %p463_p5 = scmp.lt.u32.totalorder %s461_s8, %s456_s5 }
  0x18   : > { %p465_p8 = scmp.lt.u32.totalorder %s456_s5, %s640_s28 }
  0x19   : > { %p460_p3 = pneg %p459_p2  ;;  %p464_p7 = por %p463_p5, %p462_p4 }
  0x1b   : > { %p466_p10 = por %p465_p8, %p464_p7 }
  0x1d   : > { %p467_p9 = pnand %p466_p10, %p460_p3 }
  0x1f   : > { %470 = shalt.err (!%p467_p9)
}
  0x20   : > { %s471_s17 = scalar_lea.vmem %s648_s30, 1024  ;;  %s554_s19 = smov [#allocation2]  }
  0x21   : > { %p472_p0 = scmp.ne.s32.totalorder %s648_s30, %s471_s17  ;;  %s476_s23 = sshll.u32 %s554_s19, 4  ;;  %s477_s23 = int_to_ptr.vmem [resolvable:$false] %s476_s23 }
  0x22   : > { %s478_s24 = scalar_lea.vmem %s477_s23, 2048  ;;  %p479_p11 = scmp.lt.s32.totalorder %s648_s30, %s477_s23 }
  0x23   : > { %p474_p2 = pnand %p472_p0, %p458_p1  ;;  %p480_p4 = scmp.lt.s32.totalorder %s478_s24, %s471_s17 }
  0x25   : > { %p475_p12 = pneg %p474_p2  ;;  %p481_p5 = por %p480_p4, %p479_p11 }
  0x27   : > { %p482_p7 = pnand %p481_p5, %p475_p12 }
  0x29   : > { %485 = shalt.err (!%p482_p7)
}
  0x2a   : > { %s555_s25 = smov 256   ;;  %s556_s26 = smov 16  }
  0x2b   : > { %395 = dma.hbm_to_vmem [thread:$0]  (!%p644_p13), %s640_s28, 1024, %s648_s30, %s650_s4, %s555_s25, %s555_s25, %s556_s26  }
  0x2c   : > { %p378_p9 = scmp.ge.s32.totalorder %s552_s12, 1  ;;  %p131_p1 = scmp.lt.s32.totalorder %s552_s12, 3 }
  0x2e   : > { %p132_p3 = pnand %p378_p9, %p131_p1 }
  0x2f   : > { %s681_s27 = sand.u32 (!%p132_p3), 1, %s544_s10  }
  0x30   : > { %135 = sbr.rel (%p132_p3) target bundleno = 662 (0x296), region = 28  ;;  %s379_s29 = sshll.u32 (!%p132_p3), %s681_s27, 6 }
  0x31   : > { %s138_s5 = scalar_lea.sflag (!%p132_p3), [#allocation3], %s681_s27  ;;  %s141_s6 = scalar_lea.vmem (!%p132_p3), [#allocation2], %s379_s29 }
  0x37   : > { %531 = dma.done.wait (%p620_p6), %s138_s5, 1024  }
  0x38   : > { %533 = vsyncadd (%p620_p6), %s138_s5, 4294966272  ;;  %v691_v0 = vld [vmem:[%s141_s6] sm:$0xff]  ;;  %v693_v1 = vld [vmem:[%s141_s6 + $0x8] sm:$0xff]  ;;  %vm194_vm0 = vcmask 15360   ;;  %s557_s16 = smov 2   ;;  %s558_s17 = smov 126  }
  0x39   : > { %v695_v2 = vld [vmem:[%s141_s6 + $0x20] sm:$0xff]  ;;  %v170_v3 = vadd.f32 %v693_v1, %v691_v0  ;;  %v699_v4 = vld [vmem:[%s141_s6 + $0x28] sm:$0xff]  ;;  %v701_v5 = vld [vmem:[%s141_s6 + $0x10] sm:$0xff]  ;;  %s161_s19 = scalar_lea.vmem [#allocation5], %s379_s29  ;;  %s387_s23 = sshll.u32 %s598_s13, 10 }
  0x3a   : > { %v703_v6 = vld [vmem:[%s141_s6 + $0x18] sm:$0xff]  ;;  %v176_v7 = vadd.f32 %v699_v4, %v695_v2  ;;  %v707_v8 = vld [vmem:[%s141_s6 + $0x30] sm:$0xff]  ;;  %v186_v15 = vld [vmem:[%s796_s1] sm:$0xff]  ;;  %s299_s24 = sshll.u32 %s161_s19, 4  ;;  %s747_s29 = scalar_lea.hbm %s797_s2, %s387_s23  ;;  %s749_s24 = int_to_ptr.vmem [resolvable:$true] %s299_s24 }
  0x3b   : > { %v709_v9 = vld [vmem:[%s141_s6 + $0x38] sm:$0xff]  ;;  %171 = vadd.xlane.f32.xlu0 %v170_v3  ;;  %v173_v10 = vadd.f32 %v703_v6, %v701_v5  ;;  %v188_v17 = vld [vmem:[%s796_s1 + $0x10] sm:$0xff]  ;;  %v187_v18 = vld [vmem:[%s796_s1 + $0x8] sm:$0xff]  ;;  %s286_s13 = scalar_lea.sflag [#allocation4], %s681_s27  ;;  %s486_s5 = scalar_lea.vmem %s749_s24, 1024 }
  0x3c   : > { %177 = vadd.xlane.f32.xlu1 %v176_v7  ;;  %v179_v11 = vadd.f32 %v709_v9, %v707_v8  ;;  %v189_v22 = vld [vmem:[%s796_s1 + $0x18] sm:$0xff]  ;;  %p487_p6 = scmp.ne.s32.totalorder %s749_s24, %s486_s5  ;;  %p804_p11 = scmp.ne.s32.totalorder %s801_s21, 0 }
  0x3d   : > { %s559_s6 = smov [#allocation5]  }
  0x3e   : > { %p488_p12 = pnand %p487_p6, %p804_p11  ;;  %s490_s20 = sshll.u32 %s559_s6, 4  ;;  %s491_s20 = int_to_ptr.vmem [resolvable:$false] %s490_s20 }
  0x3f   : > { %174 = vadd.xlane.f32.xlu0 %v173_v10  ;;  %s492_s28 = scalar_lea.vmem %s491_s20, 2048  ;;  %p493_p8 = scmp.lt.s32.totalorder %s749_s24, %s491_s20 }
  0x40   : > { %180 = vadd.xlane.f32.xlu1 %v179_v11  ;;  %p489_p13 = pneg %p488_p12  ;;  %p494_p10 = scmp.lt.s32.totalorder %s492_s28, %s486_s5 }
  0x42   : > { %p495_p0 = por %p494_p10, %p493_p8 }
  0x44   : > { %p496_p2 = pnand %p495_p0, %p489_p13 }
  0xc8   : > { %v172_v12 = vpop.xlane.xlu0 %171 }
  0xc9   : > { %v182_v13 = vmul.f32 0.00390625, %v172_v12  ;;  %v178_v14 = vpop.xlane.xlu1 %177 }
  0xca   : > { %v184_v16 = vmul.f32 0.00390625, %v178_v14 }
  0xcb   : > { %v190_v20 = vmul.f32 %v186_v15, %v182_v13 }
  0xcc   : > { %v175_v19 = vpop.xlane.xlu0 %174  ;;  %v192_v25 = vmul.f32 %v188_v17, %v184_v16 }
  0xcd   : > { %v183_v21 = vmul.f32 0.00390625, %v175_v19  ;;  %v181_v23 = vpop.xlane.xlu1 %180  ;;  %v195_v28 = vsel %vm194_vm0, %v190_v20, 0.0 }
  0xce   : > { %v185_v24 = vmul.f32 0.00390625, %v181_v23  ;;  %v198_v31 = vsel %vm194_vm0, %v192_v25, 0.0 }
  0xcf   : > { %v191_v26 = vmul.f32 %v187_v18, %v183_v21 }
  0xd0   : > { %v193_v27 = vmul.f32 %v189_v22, %v185_v24 }
  0xd1   : > { %v196_v29 = vsel %vm194_vm0, %v191_v26, 0.0 }
  0xd2   : > { %v197_v30 = vadd.f32 %v196_v29, %v195_v28  ;;  %v200_v32 = vsel %vm194_vm0, %v193_v27, 0.0 }
  0xd4   : > { %v199_v33 = vadd.f32 %v198_v31, %v197_v30 }
  0xd6   : > { %v201_v34 = vadd.f32 %v200_v32, %v199_v33 }
  0xd8   : > { %v202_v35 = vrot.slane %v201_v34, 4 }
  0xda   : > { %v203_v36 = vadd.f32 %v202_v35, %v201_v34 }
  0xdc   : > { %v204_v37 = vrot.slane %v203_v36, 2 }
  0xde   : > { %v205_v38 = vadd.f32 %v204_v37, %v203_v36 }
  0xe0   : > { %v206_v39 = vrot.slane %v205_v38, 1 }
  0xe2   : > { %v207_v40 = vadd.f32 %v206_v39, %v205_v38 }
  0xe4   : > { %v208_v41 = vmax.f32 %v207_v40, 0.0 }
  0xe6   : > { %210 = vrot.lane.b32.xlu0 %v208_v41, %s557_s16 }
 0x158   : > { %v211_v42 = vpop.permute.xlu0 %210 }
 0x159   : > { %v216_v43 = vmul.f32 %v211_v42, %v189_v22  ;;  %v213_v44 = vmul.f32 %v211_v42, %v186_v15  ;;  %v214_v45 = vmul.f32 %v211_v42, %v187_v18  ;;  %v215_v46 = vmul.f32 %v211_v42, %v188_v17 }
 0x15b   : > { %227 = vrot.lane.b32.xlu0 %v216_v43, %s558_s17  ;;  %221 = vrot.lane.b32.xlu1 %v213_v44, %s558_s17 }
 0x15f   : > { %223 = vrot.lane.b32.xlu1 %v214_v45, %s558_s17 }
 0x163   : > { %225 = vrot.lane.b32.xlu1 %v215_v46, %s558_s17 }
 0x1cd   : > { %v222_v47 = vpop.permute.xlu1 %221  ;;  %v228_v53 = vpop.permute.xlu0 %227 }
 0x1ce   : > { %v233_v48 = vsel %vm194_vm0, %v222_v47, 0.0  ;;  %v242_v54 = vsel %vm194_vm0, %v228_v53, 0.0 }
 0x1cf   : > { %234 = vadd.xlane.f32.xlu1 %v233_v48 }
 0x1d1   : > { %v224_v49 = vpop.permute.xlu1 %223 }
 0x1d2   : > { %v236_v50 = vsel %vm194_vm0, %v224_v49, 0.0 }
 0x1d3   : > { %237 = vadd.xlane.f32.xlu0 %v236_v50 }
 0x1d5   : > { %v226_v51 = vpop.permute.xlu1 %225 }
 0x1d6   : > { %v239_v52 = vsel %vm194_vm0, %v226_v51, 0.0 }
 0x1d7   : > { %240 = vadd.xlane.f32.xlu0 %v239_v52 }
 0x1db   : > { %243 = vadd.xlane.f32.xlu0 %v242_v54 }
 0x25c   : > { %v235_v55 = vpop.xlane.xlu1 %234 }
 0x25d   : > { %v245_v56 = vsub.f32 0.0, %v235_v55 }
 0x25f   : > { %v249_v57 = vmul.f32 1.442695, %v245_v56 }
 0x260   : > { %v238_v58 = vpop.xlane.xlu0 %237 }
 0x261   : > { %440 = vpow2.f32 %v249_v57  ;;  %v246_v59 = vsub.f32 0.0, %v238_v58 }
 0x263   : > { %v251_v60 = vmul.f32 1.442695, %v246_v59 }
 0x264   : > { %v241_v61 = vpop.xlane.xlu0 %240 }
 0x265   : > { %442 = vpow2.f32 %v251_v60  ;;  %v247_v62 = vsub.f32 0.0, %v241_v61 }
 0x267   : > { %v253_v63 = vmul.f32 1.442695, %v247_v62 }
 0x268   : > { %v244_v3 = vpop.xlane.xlu0 %243 }
 0x269   : > { %444 = vpow2.f32 %v253_v63  ;;  %v248_v7 = vsub.f32 0.0, %v244_v3 }
 0x26b   : > { %v441_v10 = vpop.eup %440  ;;  %v255_v11 = vmul.f32 1.442695, %v248_v7 }
 0x26c   : > { %v257_v12 = vadd.f32 1.0, %v441_v10 }
 0x26d   : > { %446 = vpow2.f32 %v255_v11 }
 0x26e   : > { %448 = vrcp.f32 %v257_v12 }
 0x26f   : > { %v443_v13 = vpop.eup %442 }
 0x270   : > { %v258_v14 = vadd.f32 1.0, %v443_v13 }
 0x272   : > { %450 = vrcp.f32 %v258_v14 }
 0x273   : > { %v445_v15 = vpop.eup %444 }
 0x274   : > { %v259_v16 = vadd.f32 1.0, %v445_v15 }
 0x276   : > { %452 = vrcp.f32 %v259_v16 }
 0x277   : > { %v447_v17 = vpop.eup %446 }
 0x278   : > { %v449_v18 = vpop.eup %448  ;;  %v260_v19 = vadd.f32 1.0, %v447_v17 }
 0x279   : > { %v269_v20 = vmul.f32 %v449_v18, %v691_v0  ;;  %v270_v21 = vmul.f32 %v449_v18, %v693_v1 }
 0x27a   : > { %454 = vrcp.f32 %v260_v19 }
 0x27b   : > { %277 = vst [vmem:[%s161_s19] sm:$0xff] %v269_v20  ;;  %278 = vst [vmem:[%s161_s19 + $0x8] sm:$0xff] %v270_v21 }
 0x27c   : > { %v451_v22 = vpop.eup %450 }
 0x27d   : > { %v271_v23 = vmul.f32 %v451_v22, %v701_v5  ;;  %v272_v24 = vmul.f32 %v451_v22, %v703_v6 }
 0x27f   : > { %279 = vst [vmem:[%s161_s19 + $0x10] sm:$0xff] %v271_v23  ;;  %280 = vst [vmem:[%s161_s19 + $0x18] sm:$0xff] %v272_v24 }
 0x280   : > { %v453_v25 = vpop.eup %452 }
 0x281   : > { %v273_v26 = vmul.f32 %v453_v25, %v695_v2  ;;  %v274_v0 = vmul.f32 %v453_v25, %v699_v4 }
 0x283   : > { %281 = vst [vmem:[%s161_s19 + $0x20] sm:$0xff] %v273_v26  ;;  %282 = vst [vmem:[%s161_s19 + $0x28] sm:$0xff] %v274_v0 }
 0x284   : > { %v455_v1 = vpop.eup %454 }
 0x285   : > { %v275_v2 = vmul.f32 %v455_v1, %v707_v8  ;;  %v276_v5 = vmul.f32 %v455_v1, %v709_v9 }
 0x287   : > { %283 = vst [vmem:[%s161_s19 + $0x30] sm:$0xff] %v275_v2  ;;  %284 = vst [vmem:[%s161_s19 + $0x38] sm:$0xff] %v276_v5 }
 0x288   : > { %499 = shalt.err (!%p496_p2)
}
 0x289   : > { %s500_s30 = scalar_lea.hbm %s747_s29, 1024  ;;  %s504_s7 = scalar_lea.hbm %s797_s2, 2048 }
 0x28a   : > { %p501_p4 = scmp.ne.s32.totalorder %s747_s29, %s500_s30  ;;  %p505_p9 = scmp.lt.u32.totalorder %s747_s29, %s797_s2 }
 0x28b   : > { %p506_p1 = scmp.lt.u32.totalorder %s504_s7, %s500_s30  ;;  %p508_p6 = scmp.lt.u32.totalorder %s500_s30, %s747_s29 }
 0x28c   : > { %p502_p5 = pnand %p501_p4, %p804_p11 }
 0x28d   : > { %p507_p3 = por %p506_p1, %p505_p9 }
 0x28e   : > { %p503_p7 = pneg %p502_p5 }
 0x28f   : > { %p509_p12 = por %p508_p6, %p507_p3 }
 0x291   : > { %p510_p13 = pnand %p509_p12, %p503_p7 }
 0x293   : > { %513 = shalt.err (!%p510_p13)
}
 0x294   : > { %s560_s16 = smov 256   ;;  %s561_s17 = smov 16  }
 0x295   : > { %390 = dma.vmem_to_hbm [thread:$0]  (%p804_p11), %s749_s24, 1024, %s747_s29, %s286_s13, %s560_s16, %s560_s16, %s561_s17  }
 0x296 PF: > { %s314_s19 = sand.u32 1, %s540_s9   ;;  %p805_p8 = scmp.ne.s32.totalorder %s802_s22, 0 }
 0x297   : > { %p806_p10 = scmp.ge.s32.totalorder %s552_s12, 2  ;;  %s315_s23 = scalar_lea.sflag [#allocation4], %s314_s19 }
 0x299   : > { %p397_p0 = pnand %p806_p10, %p805_p8 }
 0x29b   : > { %535 = dma.done.wait (!%p397_p0), %s315_s23, 1024  }
 0x29c   : > { %537 = vsyncadd (!%p397_p0), %s315_s23, 4294966272  ;;  %p15_p2 = scmp.ge.s32.totalorder %s602_s15, 4   ;;  %s807_s9 = smov %s544_s10 }
 0x29d   : > { %s808_s10 = smov %s548_s11  ;;  %s809_s11 = smov %s614_s18 }
 0x29e   : > { %s810_s12 = smov %s602_s15  ;;  %17 = sbr.rel (!%p15_p2) target bundleno = 5 (0x5), region = 73 }
 0x2a5   :  { %320 = vsyncpa [#allocation3], 1 }
 0x2a6   :  { %322 = vsyncpa [#allocation3 + $0x1], 1 }
 0x2a7   :  { %323 = vsyncpa [#allocation4], 1 }
 0x2a8   :  { %325 = vsyncpa [#allocation4 + $0x1], 1 }

</bundles_post_ra>
